<compile_context>
chip_gen: v5e
topology: v5e:2x2
jax: 0.10.0
libtpu: 0.0.40
codegen_flags: <defaults>
</compile_context>

<pallas_src>
import jax
import jax.numpy as jnp
from jax import lax
from jax.experimental import pallas as pl
from jax.experimental.pallas import tpu as pltpu

GAMMA = 2.0   # compile-time; forward uses (1 - p)**2 == w * w
EPS = 1e-7    # present in the PyTorch __init__ but unused in forward


def _focal_loss_kernel(n_ref, x_ref, t_ref, o_ref):
    # n_ref: (1,) int32 in SMEM (scalar prefetch) -- number of valid rows N
    # x_ref: (TILE_N, C) logits tile in VMEM (caller dtype)
    # t_ref: (TILE_N, 1) int32 target tile in VMEM
    # o_ref: (1, 1) f32 per-tile partial sum (summed / divided by N in XLA)
    i = pl.program_id(0)

    x = x_ref[...]                                            # (TILE_N, C)
    t = t_ref[...]                                            # (TILE_N, 1) int32
    tn, c = x.shape

    # numerically-stable softmax pieces: max / subtract in the native dtype
    # (bf16 VPU on v6e/v7x), exp / log / accumulation in f32.
    m = jnp.max(x, axis=-1, keepdims=True)                    # (TILE_N, 1)
    z = (x - m).astype(jnp.float32)                           # (TILE_N, C), <= 0
    exp_z = jnp.exp(z)                                        # dense EUP work
    sum_exp = jnp.sum(exp_z, axis=-1, keepdims=True)          # (TILE_N, 1)

    # one-hot masked cross-lane sums (avoid lane-axis gather); iota computed once
    cls = lax.broadcasted_iota(jnp.int32, (tn, c), 1)         # (TILE_N, C)
    onehot = cls == t
    z_t = jnp.sum(jnp.where(onehot, z, 0.0), axis=-1, keepdims=True)
    exp_z_t = jnp.sum(jnp.where(onehot, exp_z, 0.0), axis=-1, keepdims=True)

    logp = jnp.log(sum_exp) - z_t                             # per-sample CE
    p = exp_z_t / sum_exp                                     # prob of true class
    w = jnp.float32(1.0) - p
    loss = w * w * logp                                       # gamma == 2: square

    # mask ragged-tail rows: no wrapper padding, so the last block's extra rows
    # hold unspecified data; the select zeroes them before accumulation.
    row = i * tn + lax.broadcasted_iota(jnp.int32, (tn, 1), 0)
    loss = jnp.where(row < n_ref[0], loss, jnp.float32(0.0))

    o_ref[...] = jnp.sum(loss, axis=(0, 1), keepdims=True)    # (1, 1) partial sum


def focal_loss(logits, targets, *, tile_n=None):
    """logits: (N, C) float (f32 or bf16); targets: (N,) int. Returns scalar f32."""
    n, c = logits.shape
    dtype_bytes = jnp.dtype(logits.dtype).itemsize
    # sublane multiple for the logits dtype: 8 (f32), 16 (bf16), 32 (int8/fp8)
    sub = max(8, 32 // dtype_bytes)
    c_pad = pl.cdiv(c, 128) * 128            # lane-padded class width in VMEM

    if tile_n is None:
        # Per-row VMEM model (all lane-padded):
        #   2x double-buffered inputs: logits (c_pad*db) + targets (128 lanes int32)
        #   + ~2 dense f32 temporaries + ~2 KiB of (tile,1) per-row temporaries.
        per_row = 2 * (c_pad * dtype_bytes + 128 * 4) + 2 * c_pad * 4 + 2048
        budget = 40 * 1024 * 1024            # stay under 48 MiB scoped (v7x: 64 MiB VMEM)
        tile_n = budget // per_row
    tile_n = int(tile_n)
    tile_n = max(sub, (tile_n // sub) * sub)
    tile_n = min(tile_n, pl.cdiv(n, sub) * sub)   # don't exceed (rounded-up) N
    n_tiles = pl.cdiv(n, tile_n)

    t2d = targets.astype(jnp.int32).reshape(n, 1)      # free layout reshape
    n_arr = jnp.asarray([n], dtype=jnp.int32)          # scalar-prefetch operand

    cost = pl.CostEstimate(
        flops=8 * n * c,
        transcendentals=n * c + 2 * n,
        bytes_accessed=n * c * dtype_bytes + n * 4 + n_tiles * 4,
    )

    partial = pl.pallas_call(
        _focal_loss_kernel,
        out_shape=jax.ShapeDtypeStruct((n_tiles, 1), jnp.float32),
        grid_spec=pltpu.PrefetchScalarGridSpec(
            num_scalar_prefetch=1,
            grid=(n_tiles,),
            in_specs=[
                pl.BlockSpec((tile_n, c), lambda i, n_ref: (i, 0)),
                pl.BlockSpec((tile_n, 1), lambda i, n_ref: (i, 0)),
            ],
            out_specs=pl.BlockSpec((1, 1), lambda i, n_ref: (i, 0)),
        ),
        compiler_params=pltpu.CompilerParams(
            dimension_semantics=("parallel",),
            vmem_limit_bytes=48 * 1024 * 1024,
        ),
        cost_estimate=cost,
    )(n_arr, logits, t2d)

    return jnp.sum(partial) / jnp.float32(n)


def focal_loss_ref(logits, targets):
    # pure-JAX reference mirroring torch CrossEntropyLoss(reduction='none') + focal weight
    logp_all = jax.nn.log_softmax(logits.astype(jnp.float32), axis=-1)
    logp = -jnp.take_along_axis(
        logp_all, targets[:, None].astype(jnp.int32), axis=-1)[:, 0]
    p = jnp.exp(-logp)
    return jnp.mean((1.0 - p) ** GAMMA * logp)


if __name__ == "__main__":
    key = jax.random.PRNGKey(0)
    k1, k2, k3, k4 = jax.random.split(key, 4)

    # Small shapes implied by the module: (batch, num_classes) logits + class indices.
    N, C = 8, 32
    logits = jax.random.normal(k1, (N, C), dtype=jnp.float32)
    targets = jax.random.randint(k2, (N,), 0, C, dtype=jnp.int32)
    out = jax.block_until_ready(focal_loss(logits, targets))
    ref = focal_loss_ref(logits, targets)
    assert jnp.allclose(out, ref, rtol=1e-5, atol=1e-6), (out, ref)

    # Multi-tile + ragged-tail path (grid > 1, un-padded last block masked in-kernel,
    # per-tile partial sums reduced in XLA).
    N2, C2 = 300, 160
    logits2 = jax.random.normal(k3, (N2, C2), dtype=jnp.float32)
    targets2 = jax.random.randint(k4, (N2,), 0, C2, dtype=jnp.int32)
    out2 = jax.block_until_ready(focal_loss(logits2, targets2, tile_n=128))
    ref2 = focal_loss_ref(logits2, targets2)
    assert jnp.allclose(out2, ref2, rtol=1e-5, atol=1e-6), (out2, ref2)

    print("KERNEL_OK")
</pallas_src>

<mosaic_0001>
module attributes {stable_mosaic.version = 11 : i64} {
  func.func @_focal_loss_kernel(%arg0: i32, %arg1: memref<1xi32, #tpu.memory_space<smem>>, %arg2: memref<8x32xf32, #tpu.memory_space<vmem>>, %arg3: memref<8x1xi32, #tpu.memory_space<vmem>>, %arg4: memref<1x1xf32, #tpu.memory_space<vmem>>) attributes {dimension_semantics = [#tpu.dimension_semantics<parallel>], iteration_bounds = array<i64: 1>, scalar_prefetch = 1 : i64, scratch_operands = 0 : i64, tpu.core_type = #tpu.core_type<tc>, window_params = [{transform_indices = @transform_0, window_bounds = array<i64: 8, 32>}, {transform_indices = @transform_1, window_bounds = array<i64: 8, 1>}, {transform_indices = @transform_2, window_bounds = array<i64: 1, 1>}]} {
    %c0 = arith.constant 0 : index
    %c0_0 = arith.constant 0 : index
    %0 = vector.load %arg2[%c0, %c0_0] : memref<8x32xf32, #tpu.memory_space<vmem>>, vector<8x32xf32>
    %c0_1 = arith.constant 0 : index
    %c0_2 = arith.constant 0 : index
    %1 = vector.load %arg3[%c0_1, %c0_2] : memref<8x1xi32, #tpu.memory_space<vmem>>, vector<8x1xi32>
    %cst = arith.constant dense<0xFF800000> : vector<8xf32>
    %2 = vector.multi_reduction <maximumf>, %0, %cst [1] : vector<8x32xf32> to vector<8xf32>
    %3 = vector.shape_cast %2 : vector<8xf32> to vector<8x1xf32>
    %4 = vector.broadcast %3 : vector<8x1xf32> to vector<8x32xf32>
    %5 = arith.subf %0, %4 : vector<8x32xf32>
    %6 = math.exp %5 : vector<8x32xf32>
    %cst_3 = arith.constant dense<0.000000e+00> : vector<8xf32>
    %7 = vector.multi_reduction <add>, %6, %cst_3 [1] : vector<8x32xf32> to vector<8xf32>
    %8 = vector.shape_cast %7 : vector<8xf32> to vector<8x1xf32>
    %9 = tpu.iota {dimensions = array<i32: 1>} : vector<8x32xi32>
    %10 = vector.broadcast %1 : vector<8x1xi32> to vector<8x32xi32>
    %11 = arith.cmpi eq, %9, %10 : vector<8x32xi32>
    %cst_4 = arith.constant 0.000000e+00 : f32
    %12 = vector.broadcast %cst_4 : f32 to vector<8x32xf32>
    %13 = arith.select %11, %5, %12 : vector<8x32xi1>, vector<8x32xf32>
    %cst_5 = arith.constant dense<0.000000e+00> : vector<8xf32>
    %14 = vector.multi_reduction <add>, %13, %cst_5 [1] : vector<8x32xf32> to vector<8xf32>
    %15 = vector.shape_cast %14 : vector<8xf32> to vector<8x1xf32>
    %cst_6 = arith.constant 0.000000e+00 : f32
    %16 = vector.broadcast %cst_6 : f32 to vector<8x32xf32>
    %17 = arith.select %11, %6, %16 : vector<8x32xi1>, vector<8x32xf32>
    %cst_7 = arith.constant dense<0.000000e+00> : vector<8xf32>
    %18 = vector.multi_reduction <add>, %17, %cst_7 [1] : vector<8x32xf32> to vector<8xf32>
    %19 = vector.shape_cast %18 : vector<8xf32> to vector<8x1xf32>
    %20 = math.log %8 : vector<8x1xf32>
    %21 = arith.subf %20, %15 : vector<8x1xf32>
    %22 = arith.divf %19, %8 : vector<8x1xf32>
    %cst_8 = arith.constant 1.000000e+00 : f32
    %23 = vector.broadcast %cst_8 : f32 to vector<8x1xf32>
    %24 = arith.subf %23, %22 : vector<8x1xf32>
    %25 = arith.mulf %24, %24 : vector<8x1xf32>
    %26 = arith.mulf %25, %21 : vector<8x1xf32>
    %c8_i32 = arith.constant 8 : i32
    %27 = arith.muli %arg0, %c8_i32 : i32
    %28 = tpu.iota {dimensions = array<i32: 0>} : vector<8x1xi32>
    %29 = vector.broadcast %27 : i32 to vector<8x1xi32>
    %30 = arith.addi %29, %28 : vector<8x1xi32>
    %c0_9 = arith.constant 0 : index
    %31 = memref.load %arg1[%c0_9] : memref<1xi32, #tpu.memory_space<smem>>
    %32 = vector.broadcast %31 : i32 to vector<8x1xi32>
    %33 = arith.cmpi slt, %30, %32 : vector<8x1xi32>
    %cst_10 = arith.constant 0.000000e+00 : f32
    %34 = vector.broadcast %cst_10 : f32 to vector<8x1xf32>
    %35 = arith.select %33, %26, %34 : vector<8x1xi1>, vector<8x1xf32>
    %36 = vector.shape_cast %35 : vector<8x1xf32> to vector<1x8x1xf32>
    %cst_11 = arith.constant dense<0.000000e+00> : vector<1xf32>
    %37 = vector.multi_reduction <add>, %36, %cst_11 [1, 2] : vector<1x8x1xf32> to vector<1xf32>
    %38 = vector.shape_cast %37 : vector<1xf32> to vector<1x1x1xf32>
    %39 = vector.extract %38[0, 0, 0] : f32 from vector<1x1x1xf32>
    %40 = vector.broadcast %39 : f32 to vector<1x1xf32>
    %c0_12 = arith.constant 0 : index
    %c0_13 = arith.constant 0 : index
    %41 = vector.load %arg4[%c0_12, %c0_13] : memref<1x1xf32, #tpu.memory_space<vmem>>, vector<1x1xf32>
    tpu.vector_store %arg4[%c0_12, %c0_13], %40 {strides = array<i32>} : memref<1x1xf32, #tpu.memory_space<vmem>>, vector<1x1xf32>,
    return
  }
  func.func @transform_0(%arg0: i32, %arg1: memref<1xi32, #tpu.memory_space<smem>>) -> (i32, i32) {
    %c0_i32 = arith.constant 0 : i32
    %c0_i32_0 = arith.constant 0 : i32
    return %arg0, %c0_i32 : i32, i32
  }
  func.func @transform_1(%arg0: i32, %arg1: memref<1xi32, #tpu.memory_space<smem>>) -> (i32, i32) {
    %c0_i32 = arith.constant 0 : i32
    %c0_i32_0 = arith.constant 0 : i32
    return %arg0, %c0_i32 : i32, i32
  }
  func.func @transform_2(%arg0: i32, %arg1: memref<1xi32, #tpu.memory_space<smem>>) -> (i32, i32) {
    %c0_i32 = arith.constant 0 : i32
    %c0_i32_0 = arith.constant 0 : i32
    return %arg0, %c0_i32 : i32, i32
  }
}

</mosaic_0001>

<bundles_post_ra>
// kernel: tpu_custom_call.1
= control target key start
LH: loop header
LB: loop body
LE: loop exit
PB: predicated region body
PF: predicated region fallthrough
CT: control target
= control target key end

     0   :  { %vm16_vm0 = vcmask 261120   ;;  %s175_s0 = inlined_call_operand.<no memory space> [shape: s32[1], index: 0, kind: input, shape index: {}]   ;;  %s176_s1 = inlined_call_operand.vmem [shape: f32[8,32], index: 1, kind: input, shape index: {}]   ;;  %s177_s2 = inlined_call_operand.vmem [shape: s32[8,1], index: 2, kind: input, shape index: {}]   ;;  %s178_s3 = inlined_call_operand.hbm [shape: f32[1,1], index: 3, kind: output, shape index: {}]  }
   0x1   :  { %v14_v0 = vld [vmem:[%s176_s1] sm:$0xff] }
   0x2   :  { %9 = vsyncpa [#allocation5], 0  ;;  %v17_v1 = vsel %vm16_vm0, %v14_v0, -inf  ;;  %v137_v2 = vmov 0   ;;  %v15_v3 = vld [vmem:[%s177_s2] sm:$0xff]  ;;  %v26_v9 = vlaneseq  ;;  %v67_v34 = vstv %s175_s0  ;;  %s138_s16 = smov [#allocation4]  }
   0x3   :  { %104 = vset.pattern.permute.xlu0 %v137_v2  ;;  %vm70_vm7 = vcmask 7168   ;;  %s89_s17 = sshll.u32 %s138_s16, 4  ;;  %s91_s19 = sshll.u32 %s178_s3, 4  ;;  %vm82_vm8 = vcmask 0   ;;  %s90_s17 = int_to_ptr.vmem [resolvable:$true] %s89_s17  ;;  %s92_s19 = int_to_ptr.hbm [resolvable:$true] %s91_s19 }
   0x4   :  { %18 = vmax.xlane.f32.xlu0 %v17_v1  ;;  %v27_v10 = vand.u32 127, %v26_v9  ;;  %v63_v32 = vshrl.u32 %v26_v9, 7 }
   0x6   :  { %vm68_vm6 = vcmp.lt.s32.totalorder %v63_v32, %v67_v34 }
  0x18   :  { %29 = vperm.xlu0 %104, %v15_v3  }
  0x77   :  { %v19_v4 = vpop.xlane.xlu0 %18 }
  0x78   :  { %v20_v5 = vsub.f32 %v14_v0, %v19_v4 }
  0x7a   :  { %v21_v6 = vmul.f32 1.442695, %v20_v5 }
  0x7c   :  { %105 = vpow2.f32 %v21_v6 }
  0x82   :  { %v106_v7 = vpop.eup %105 }
  0x83   :  { %v23_v8 = vsel %vm16_vm0, %v106_v7, 0.0 }
  0x84   :  { %24 = vadd.xlane.f32.xlu1 %v23_v8 }
  0x8a   :  { %v30_v11 = vpop.permute.xlu0 %29 }
  0x8b   :  { %vm31_vm1 = vcmp.eq.s32.totalorder %v27_v10, %v30_v11 }
  0x8c   :  { %v36_v12 = vsel %vm31_vm1, %v106_v7, 0.0  ;;  %v32_v13 = vsel %vm31_vm1, %v20_v5, 0.0 }
  0x8d   :  { %v37_v14 = vsel %vm16_vm0, %v36_v12, 0.0  ;;  %v33_v15 = vsel %vm16_vm0, %v32_v13, 0.0 }
  0x8e   :  { %38 = vadd.xlane.f32.xlu1 %v37_v14  ;;  %34 = vadd.xlane.f32.xlu2 %v33_v15 }
  0xf7   :  { %v25_v16 = vpop.xlane.xlu1 %24 }
  0xf8   :  { %107 = vrcp.f32 %v25_v16  ;;  %v54_v20 = vand.u32 2147483648, %v25_v16  ;;  %v52_v22 = vand.u32 2147483647, %v25_v16  ;;  %vm48_vm3 = vweird.f32 %v25_v16 }
  0xf9   :  { %109 = vlog2.f32 %v25_v16 }
  0xfa   :  { %v55_v25 = vor.u32 1.1754944e-38, %v54_v20  ;;  %vm53_vm5 = vcmp.eq.f32.partialorder %v52_v22, 8.507059e+37 }
  0xfe   :  { %v108_v17 = vpop.eup %107 }
  0xff   :  { %v44_v18 = vmul.f32 %v108_v17, %v25_v16  ;;  %vm49_vm2 = vweird.f32 %v108_v17  ;;  %v110_v24 = vpop.eup %109 }
 0x100   :  { %vm50_vm4 = vmor %vm48_vm3, %vm49_vm2  ;;  %v41_v30 = vmul.f32 0.6931472, %v110_v24 }
 0x101   :  { %v45_v19 = vsub.f32 1.0, %v44_v18  ;;  %v39_v28 = vpop.xlane.xlu1 %38  ;;  %v35_v31 = vpop.xlane.xlu2 %34 }
 0x102   :  { %v42_v36 = vsub.f32 %v41_v30, %v35_v31 }
 0x103   :  { %v46_v21 = vmul.f32 %v108_v17, %v45_v19 }
 0x105   :  { %v47_v23 = vadd.f32 %v108_v17, %v46_v21 }
 0x107   :  { %v51_v26 = vsel %vm50_vm4, %v108_v17, %v47_v23 }
 0x108   :  { %v56_v27 = vsel %vm53_vm5, %v55_v25, %v51_v26 }
 0x109   :  { %v57_v29 = vmul.f32 %v56_v27, %v39_v28 }
 0x10b   :  { %v58_v33 = vsub.f32 1.0, %v57_v29 }
 0x10d   :  { %v59_v35 = vmul.f32 %v58_v33, %v58_v33 }
 0x10f   :  { %v60_v37 = vmul.f32 %v59_v35, %v42_v36 }
 0x111   :  { %v69_v38 = vsel %vm68_vm6, %v60_v37, 0.0 }
 0x112   :  { %v71_v39 = vsel %vm70_vm7, %v69_v38, 0.0 }
 0x113   :  { %72 = vadd.xlane.f32.xlu2 %v71_v39 }
 0x186   :  { %v73_v40 = vpop.xlane.xlu2 %72 }
 0x187   :  { %v74_v41 = vrot.slane %v73_v40, 4 }
 0x189   :  { %v75_v42 = vadd.f32 %v74_v41, %v73_v40 }
 0x18b   :  { %v76_v43 = vrot.slane %v75_v42, 2 }
 0x18d   :  { %v77_v44 = vadd.f32 %v76_v43, %v75_v42 }
 0x18f   :  { %v78_v45 = vrot.slane %v77_v44, 1 }
 0x191   :  { %v79_v46 = vadd.f32 %v78_v45, %v77_v44 }
 0x193   :  { %100 = vpush %v79_v46 }
 0x1c4   :  { %s101_s20 = spop %100 }
 0x1c5   :  { %v81_v47 = vstv %s101_s20 }
 0x1c6   :  { %83 = vst.msk [vmem:[#allocation4] sm:$0x1] %vm82_vm8, %v81_v47 }
 0x1c7   :  { %94 = dma.vmem_to_hbm [thread:$0]  %s90_s17, 16, %s92_s19, [#allocation5]  }
 0x1c8   :  { %135 = dma.done.wait [#allocation5], 16  }
 0x1c9   :  { %136 = vsyncadd [#allocation5], 4294967280 }
 0x1ca   :  { %99 = vsyncpa [#allocation5], 1 }

</bundles_post_ra>
